<compile_context>
chip_gen: v7x
topology: tpu7x:2x2x1
jax: 0.10.0
libtpu: 0.0.40
codegen_flags: <defaults>
</compile_context>

<pallas_src>
import functools

import jax
import jax.numpy as jnp
from jax.experimental import pallas as pl
from jax.experimental.pallas import tpu as pltpu


def _rmsnorm_kernel(x_ref, scale_ref, o_ref, *, d, eps, native_bf16_out):
    # x_ref: (block_rows, d) tile, scale_ref: (1, d); d lives on the lane axis.
    # Sum-of-squares accumulation always in f32.
    xf = x_ref[...].astype(jnp.float32)
    sum_sq = jnp.sum(xf * xf, axis=-1, keepdims=True)            # (rows, 1)

    # torch: norm_x = x.norm(2, dim=-1); rms = norm_x / sqrt(d)
    rms = jnp.sqrt(sum_sq) * (d ** -0.5)                          # (rows, 1)
    denom = rms + eps                                             # eps outside sqrt (torch semantics)

    # EUP approximate reciprocal (keeps the divide off the VALU), then two
    # Newton-Raphson refinements on the tiny (rows, 1) vector: y <- y*(2 - d*y).
    inv = pl.reciprocal(denom, approx=True)
    inv = inv * (2.0 - denom * inv)
    inv = inv * (2.0 - denom * inv)

    if native_bf16_out:
        # Re-index x_ref (instead of reusing the f32 binding `xf`) so Mosaic
        # doesn't keep a full f32 copy of the tile live across the output path;
        # output multiplies run natively in bf16 (packed vregs on v6e/v7x).
        o_ref[...] = (x_ref[...] * inv.astype(o_ref.dtype)) * scale_ref[...].astype(o_ref.dtype)
    else:
        o_ref[...] = ((xf * inv) * scale_ref[...].astype(jnp.float32)).astype(o_ref.dtype)


def _vmem_capacity_bytes():
    try:
        return int(pltpu.get_tpu_info().vmem_capacity_bytes)
    except Exception:
        return 64 << 20  # conservative (v7x physical VMEM per TC)


def _choose_block_rows(rows, d, dtype, vmem_cap):
    itemsize = jnp.dtype(dtype).itemsize
    # Sublane packing: 8 rows/vreg for 32-bit, 16 for bf16, 32 for 8-bit.
    sublane = 8 * max(1, 4 // itemsize)
    # Tile size is capped by BYTES only (no row cap), so small-d inputs still
    # get multi-MiB tiles. Spend at most ~1/16 of physical VMEM per input tile:
    # 128 MiB (v5e/v6e) -> 8 MiB tiles, 64 MiB (v7x) -> 4 MiB tiles.
    target_tile_bytes = max(2 << 20, min(8 << 20, vmem_cap // 16))
    br = max(sublane, target_tile_bytes // max(1, d * itemsize))
    br = (br // sublane) * sublane
    # Don't exceed the (sublane-rounded) total number of rows.
    rows_ceil = ((rows + sublane - 1) // sublane) * sublane
    br = max(sublane, min(br, rows_ceil))
    # Guarantee >= 2 grid blocks whenever possible so the "parallel" axis can
    # shard across v7x's two TensorCores (and megacore in general).
    while br > sublane and pl.cdiv(rows, br) < 2:
        br = max(sublane, (br // 2 // sublane) * sublane)
    return br


def rmsnorm(x, scale, *, eps=1e-8, block_rows=None):
    """x: (..., d), scale: (d,). Full (non-partial) RMSNorm, no bias."""
    orig_shape = x.shape
    d = orig_shape[-1]
    x2d = x.reshape(-1, d)
    rows = x2d.shape[0]
    # TODO(synk): if d is not a multiple of 128 in production, fold rows into
    # the lane axis (segmented reduction) to keep stores lane-dense.

    vmem_cap = _vmem_capacity_bytes()
    if block_rows is None:
        block_rows = _choose_block_rows(rows, d, x.dtype, vmem_cap)

    num_blocks = pl.cdiv(rows, block_rows)
    scale2d = scale.reshape(1, d)

    native_bf16_out = jnp.dtype(x.dtype) == jnp.bfloat16

    # Explicit scoped-VMEM budget: double-buffered in/out tiles + f32 compute
    # intermediates (one transient f32 tile for bf16, two for f32 path) +
    # scale + headroom, capped below physical VMEM.
    itemsize = jnp.dtype(x.dtype).itemsize
    io_tile = block_rows * d * itemsize
    f32_tile = block_rows * d * 4
    interm = f32_tile if native_bf16_out else 2 * f32_tile
    vmem_bytes = 2 * io_tile + 2 * io_tile + interm + 2 * d * 4 + (2 << 20)
    vmem_bytes = int(min(max(vmem_bytes, 8 << 20), (vmem_cap * 3) // 4))

    kernel = functools.partial(
        _rmsnorm_kernel, d=d, eps=eps, native_bf16_out=native_bf16_out
    )

    out2d = pl.pallas_call(
        kernel,
        out_shape=jax.ShapeDtypeStruct((rows, d), x.dtype),
        grid_spec=pltpu.PrefetchScalarGridSpec(
            num_scalar_prefetch=0,
            grid=(num_blocks,),
            in_specs=[
                # Ragged last block handled by Pallas: boundary reads are
                # row-independent garbage, boundary writes are masked.
                pl.BlockSpec((block_rows, d), lambda i: (i, 0)),
                # Constant index_map -> scale fetched once, not re-DMA'd per step.
                pl.BlockSpec((1, d), lambda i: (0, 0)),
            ],
            out_specs=pl.BlockSpec((block_rows, d), lambda i: (i, 0)),
        ),
        compiler_params=pltpu.CompilerParams(
            dimension_semantics=("parallel",),
            vmem_limit_bytes=vmem_bytes,
        ),
    )(x2d, scale2d)

    return out2d.reshape(orig_shape)


def rmsnorm_ref(x, scale, eps=1e-8):
    d = x.shape[-1]
    norm_x = jnp.linalg.norm(x.astype(jnp.float32), axis=-1, keepdims=True)
    rms = norm_x * (d ** -0.5)
    return (scale.astype(jnp.float32) * (x.astype(jnp.float32) / (rms + eps))).astype(x.dtype)


if __name__ == "__main__":
    key = jax.random.PRNGKey(0)

    # Shapes implied by the module usage: (batch, seq, d)
    batch, seq, d = 2, 8, 32
    x = jax.random.normal(key, (batch, seq, d), dtype=jnp.float32)
    # Deterministic parameter init, matching nn.Parameter(torch.ones(d)).
    scale = jnp.ones((d,), dtype=jnp.float32)

    out = jax.block_until_ready(rmsnorm(x, scale, eps=1e-8))
    ref = rmsnorm_ref(x, scale, eps=1e-8)
    assert out.shape == x.shape
    assert jnp.allclose(out, ref, atol=1e-5, rtol=1e-5), "mismatch vs reference"

    # Second check: rows not divisible by the tile (exercises the ragged
    # last-block path, now without any jnp.pad/slice in the wrapper) and a
    # non-trivial scale (exercises the (1, d) broadcast).
    k1, k2 = jax.random.split(jax.random.PRNGKey(1))
    x2 = jax.random.normal(k1, (3, 5, 64), dtype=jnp.float32)
    scale2 = 1.0 + 0.1 * jax.random.normal(k2, (64,), dtype=jnp.float32)
    out2 = jax.block_until_ready(rmsnorm(x2, scale2, eps=1e-8))
    ref2 = rmsnorm_ref(x2, scale2, eps=1e-8)
    assert out2.shape == x2.shape
    assert jnp.allclose(out2, ref2, atol=1e-5, rtol=1e-5), "mismatch vs reference (ragged path)"

    # Third check: bf16 input exercises the native-bf16 output path
    # (bf16-appropriate tolerance: product is rounded at bf16 precision).
    x3 = jax.random.normal(jax.random.PRNGKey(2), (2, 7, 128), dtype=jnp.bfloat16)
    scale3 = jnp.ones((128,), dtype=jnp.float32)
    out3 = jax.block_until_ready(rmsnorm(x3, scale3, eps=1e-8))
    ref3 = rmsnorm_ref(x3, scale3, eps=1e-8)
    assert out3.shape == x3.shape
    assert jnp.allclose(
        out3.astype(jnp.float32), ref3.astype(jnp.float32), atol=5e-2, rtol=5e-2
    ), "mismatch vs reference (bf16 path)"

    print("KERNEL_OK")
</pallas_src>

<mosaic_0001>
module attributes {stable_mosaic.version = 11 : i64} {
  func.func @_rmsnorm_kernel(%arg0: i32, %arg1: memref<8x32xf32, #tpu.memory_space<vmem>>, %arg2: memref<1x32xf32, #tpu.memory_space<vmem>>, %arg3: memref<8x32xf32, #tpu.memory_space<vmem>>) attributes {dimension_semantics = [#tpu.dimension_semantics<parallel>], iteration_bounds = array<i64: 2>, scalar_prefetch = 0 : i64, scratch_operands = 0 : i64, tpu.core_type = #tpu.core_type<tc>, window_params = [{transform_indices = @transform_0, window_bounds = array<i64: 8, 32>}, {pipeline_mode = #tpu.pipeline_mode<synchronous>, transform_indices = @transform_1, window_bounds = array<i64: 1, 32>}, {transform_indices = @transform_2, window_bounds = array<i64: 8, 32>}]} {
    %c0 = arith.constant 0 : index
    %c0_0 = arith.constant 0 : index
    %0 = vector.load %arg1[%c0, %c0_0] : memref<8x32xf32, #tpu.memory_space<vmem>>, vector<8x32xf32>
    %1 = arith.mulf %0, %0 : vector<8x32xf32>
    %cst = arith.constant dense<0.000000e+00> : vector<8xf32>
    %2 = vector.multi_reduction <add>, %1, %cst [1] : vector<8x32xf32> to vector<8xf32>
    %3 = vector.shape_cast %2 : vector<8xf32> to vector<8x1xf32>
    %4 = math.sqrt %3 : vector<8x1xf32>
    %cst_1 = arith.constant 0.176776692 : f32
    %5 = vector.broadcast %cst_1 : f32 to vector<8x1xf32>
    %6 = arith.mulf %4, %5 : vector<8x1xf32>
    %cst_2 = arith.constant 9.99999993E-9 : f32
    %7 = vector.broadcast %cst_2 : f32 to vector<8x1xf32>
    %8 = arith.addf %6, %7 : vector<8x1xf32>
    %9 = tpu.reciprocal %8 {approx = true} : vector<8x1xf32> -> vector<8x1xf32>
    %10 = arith.mulf %8, %9 : vector<8x1xf32>
    %cst_3 = arith.constant 2.000000e+00 : f32
    %11 = vector.broadcast %cst_3 : f32 to vector<8x1xf32>
    %12 = arith.subf %11, %10 : vector<8x1xf32>
    %13 = arith.mulf %9, %12 : vector<8x1xf32>
    %14 = arith.mulf %8, %13 : vector<8x1xf32>
    %cst_4 = arith.constant 2.000000e+00 : f32
    %15 = vector.broadcast %cst_4 : f32 to vector<8x1xf32>
    %16 = arith.subf %15, %14 : vector<8x1xf32>
    %17 = arith.mulf %13, %16 : vector<8x1xf32>
    %18 = vector.broadcast %17 : vector<8x1xf32> to vector<8x32xf32>
    %19 = arith.mulf %0, %18 : vector<8x32xf32>
    %c0_5 = arith.constant 0 : index
    %c0_6 = arith.constant 0 : index
    %20 = vector.load %arg2[%c0_5, %c0_6] : memref<1x32xf32, #tpu.memory_space<vmem>>, vector<1x32xf32>
    %21 = vector.broadcast %20 : vector<1x32xf32> to vector<8x32xf32>
    %22 = arith.mulf %19, %21 : vector<8x32xf32>
    %c0_7 = arith.constant 0 : index
    %c0_8 = arith.constant 0 : index
    %23 = vector.load %arg3[%c0_7, %c0_8] : memref<8x32xf32, #tpu.memory_space<vmem>>, vector<8x32xf32>
    tpu.vector_store %arg3[%c0_7, %c0_8], %22 {strides = array<i32>} : memref<8x32xf32, #tpu.memory_space<vmem>>, vector<8x32xf32>,
    return
  }
  func.func @transform_0(%arg0: i32) -> (i32, i32) {
    %c0_i32 = arith.constant 0 : i32
    %c0_i32_0 = arith.constant 0 : i32
    return %arg0, %c0_i32 : i32, i32
  }
  func.func @transform_1(%arg0: i32) -> (i32, i32) {
    %c0_i32 = arith.constant 0 : i32
    %c0_i32_0 = arith.constant 0 : i32
    %c0_i32_1 = arith.constant 0 : i32
    return %c0_i32, %c0_i32_0 : i32, i32
  }
  func.func @transform_2(%arg0: i32) -> (i32, i32) {
    %c0_i32 = arith.constant 0 : i32
    %c0_i32_0 = arith.constant 0 : i32
    return %arg0, %c0_i32 : i32, i32
  }
}

</mosaic_0001>

<bundles_post_ra>
// kernel: tpu_custom_call.1
= control target key start
LH: loop header
LB: loop body
LE: loop exit
PB: predicated region body
PF: predicated region fallthrough
CT: control target
= control target key end

     0   :  { %7 = vsyncpa [#allocation3], 0  ;;  %s623_s0 = inlined_call_operand.hbm [shape: f32[16,32], index: 0, kind: input, shape index: {}]   ;;  %s624_s1 = inlined_call_operand.vmem [shape: f32[1,32], index: 1, kind: input, shape index: {}]   ;;  %s625_s2 = inlined_call_operand.hbm [shape: f32[16,32], index: 2, kind: output, shape index: {}]  }
   0x1   :  { %9 = vsyncpa [#allocation3 + $0x1], 0 }
   0x2   :  { %10 = vsyncpa [#allocation4], 0 }
   0x3   :  { %12 = vsyncpa [#allocation4 + $0x1], 0  ;;  %s453_s9 = smov 0   ;;  %s455_s10 = smov 0  }
   0x4   :  { %s457_s11 = smov 0   ;;  %s459_s12 = smov 0  }
   0x5 LB: > { %s474_s13 = sadd.s32 4294967295, %s434_s12   ;;  %s275_s14 = sadd.s32 4294967294, %s434_s12   ;;  %s434_s12 = sphi %s459_s12, %s640_s12   ;;  %s430_s11 = sphi %s457_s11, %s639_s11   ;;  %s426_s10 = sphi %s455_s10, %s638_s10   ;;  %s422_s9 = sphi %s453_s9, %s637_s9  }
   0x6   : > { %s478_s15 = sadd.s32 1, %s434_s12   ;;  %s25_s16 = sadd.s32 1, %s430_s11 }
   0x7   : > { %s22_s17 = ssub.s32 %s434_s12, %s478_s15  ;;  %p32_p0 = scmp.ne.s32.totalorder %s430_s11, %s426_s10 }
   0x8   : > { %p23_p1 = scmp.eq.s32.totalorder %s22_s17, 0  ;;  %p33_p2 = scmp.eq.s32.totalorder %s434_s12, 0 }
   0x9   : > { %p38_p3 = scmp.ne.s32.totalorder %s426_s10, %s422_s9  ;;  %p39_p4 = scmp.eq.s32.totalorder %s474_s13, 0 }
   0xa   : > { %s490_s18 = scalar_select %p23_p1, %s430_s11, %s25_s16  }
   0xb   : > { %p492_p5 = por %p33_p2, %p32_p0  ;;  %p496_p6 = por %p39_p4, %p38_p3 }
   0xc   : > { %p83_p7 = scmp.eq.s32.totalorder %s474_s13, 1  ;;  %p89_p8 = scmp.eq.s32.totalorder %s275_s14, 1 }
   0xd   : > { %p300_p10 = scmp.lt.s32.totalorder %s434_s12, 2  ;;  %s112_s23 = sand.u32 1, %s430_s11  }
   0xe   : > { %p503_p11 = por %p83_p7, %p32_p0  ;;  %p507_p12 = por %p89_p8, %p38_p3 }
   0xf   : > { %s279_s24 = sshll.u32 %s434_s12, 7  ;;  %s278_s25 = sshll.u32 %s112_s23, 3 }
  0x10   : > { %s629_s21 = scalar_select %p503_p11, 1, 0 }
  0x11   : > { %s630_s22 = scalar_select %p507_p12, 1, 0 }
  0x12   : > { %s516_s28 = scalar_lea.hbm %s623_s0, %s279_s24  ;;  %s116_s29 = scalar_lea.vmem [#allocation2], %s278_s25 }
  0x13   : > { %s123_s30 = sshll.u32 %s116_s29, 4  ;;  %p520_p13 = pnand %p300_p10, %p492_p5  ;;  %s524_s30 = int_to_ptr.vmem [resolvable:$true] %s123_s30 }
  0x14   : > { %s113_s4 = scalar_lea.sflag [#allocation3], %s112_s23  ;;  %s338_s5 = scalar_lea.hbm %s516_s28, 128 }
  0x15   : > { %p339_p2 = scmp.ne.s32.totalorder %s516_s28, %s338_s5  ;;  %p340_p3 = pneg %p520_p13 }
  0x16   : > { %s343_s8 = scalar_lea.hbm %s623_s0, 256  ;;  %p344_p5 = scmp.lt.u32.totalorder %s516_s28, %s623_s0 }
  0x17   : > { %p341_p4 = pnand %p340_p3, %p339_p2  ;;  %p345_p8 = scmp.lt.u32.totalorder %s343_s8, %s338_s5 }
  0x18   : > { %p347_p9 = scmp.lt.u32.totalorder %s338_s5, %s516_s28 }
  0x19   : > { %p342_p7 = pneg %p341_p4  ;;  %p346_p10 = por %p345_p8, %p344_p5 }
  0x1b   : > { %p348_p0 = por %p347_p9, %p346_p10 }
  0x1d   : > { %p349_p1 = pnand %p348_p0, %p342_p7 }
  0x1f   : > { %352 = shalt.err (!%p349_p1)
}
  0x20   : > { %s353_s17 = scalar_lea.vmem %s524_s30, 128  ;;  %s436_s19 = smov [#allocation2]  }
  0x21   : > { %p354_p2 = scmp.ne.s32.totalorder %s524_s30, %s353_s17  ;;  %s358_s23 = sshll.u32 %s436_s19, 4  ;;  %s359_s23 = int_to_ptr.vmem [resolvable:$false] %s358_s23 }
  0x22   : > { %s360_s24 = scalar_lea.vmem %s359_s23, 256  ;;  %p361_p11 = scmp.lt.s32.totalorder %s524_s30, %s359_s23 }
  0x23   : > { %p356_p4 = pnand %p354_p2, %p340_p3  ;;  %p362_p5 = scmp.lt.s32.totalorder %s360_s24, %s353_s17 }
  0x25   : > { %p357_p12 = pneg %p356_p4  ;;  %p363_p8 = por %p362_p5, %p361_p11 }
  0x27   : > { %p364_p9 = pnand %p363_p8, %p357_p12 }
  0x29   : > { %367 = shalt.err (!%p364_p9)
}
  0x2a   : > { %295 = dma.hbm_to_vmem [thread:$0]  (!%p520_p13), %s516_s28, 128, %s524_s30, %s113_s4  }
  0x2b   : > { %p632_p0 = scmp.lt.s32.totalorder %s434_s12, 3  ;;  %p633_p1 = scmp.ge.s32.totalorder %s434_s12, 1 }
  0x2d   : > { %p129_p3 = pnand %p633_p1, %p632_p0 }
  0x2e   : > { %s558_s25 = sand.u32 (!%p129_p3), 1, %s426_s10  }
  0x2f   : > { %132 = sbr.rel (%p129_p3) target bundleno = 261 (0x105), region = 28  ;;  %s281_s26 = sshll.u32 (!%p129_p3), %s558_s25, 3 }
  0x30   : > { %s135_s27 = scalar_lea.sflag (!%p129_p3), [#allocation3], %s558_s25  ;;  %s138_s29 = scalar_lea.vmem (!%p129_p3), [#allocation2], %s281_s26 }
  0x36   : > { %413 = dma.done.wait (%p496_p6), %s135_s27, 128  }
  0x37   : > { %415 = vsyncadd (%p496_p6), %s135_s27, 4294967168  ;;  %v159_v0 = vld [vmem:[%s138_s29] sm:$0xff]  ;;  %vm161_vm0 = vcmask 261120   ;;  %s285_s30 = sshll.u32 %s474_s13, 7  ;;  %s158_s3 = scalar_lea.vmem [#allocation5], %s281_s26 }
  0x38   : > { %v160_v1 = vmul.f32 %v159_v0, %v159_v0  ;;  %v283_v18 = vld [vmem:[%s624_s1] ss:$0 sm:$0xff]  ;;  %s205_s4 = sshll.u32 %s158_s3, 4  ;;  %s578_s7 = scalar_lea.hbm %s625_s2, %s285_s30  ;;  %s580_s4 = int_to_ptr.vmem [resolvable:$true] %s205_s4 }
  0x39   : > { %s192_s8 = scalar_lea.sflag [#allocation4], %s558_s25  ;;  %s368_s14 = scalar_lea.vmem %s580_s4, 128 }
  0x3a   : > { %v162_v2 = vsel %vm161_vm0, %v160_v1, 0.0  ;;  %p369_p6 = scmp.ne.s32.totalorder %s580_s4, %s368_s14  ;;  %p634_p11 = scmp.ne.s32.totalorder %s629_s21, 0 }
  0x3b   : > { %163 = vadd.xlane.f32.xlu0 %v162_v2  ;;  %s437_s13 = smov [#allocation5]  }
  0x3c   : > { %p370_p12 = pnand %p369_p6, %p634_p11  ;;  %s372_s16 = sshll.u32 %s437_s13, 4  ;;  %s373_s16 = int_to_ptr.vmem [resolvable:$false] %s372_s16 }
  0x3d   : > { %s374_s17 = scalar_lea.vmem %s373_s16, 256  ;;  %p375_p7 = scmp.lt.s32.totalorder %s580_s4, %s373_s16 }
  0x3e   : > { %p371_p13 = pneg %p370_p12  ;;  %p376_p10 = scmp.lt.s32.totalorder %s374_s17, %s368_s14 }
  0x40   : > { %p377_p2 = por %p376_p10, %p375_p7 }
  0x42   : > { %p378_p4 = pnand %p377_p2, %p371_p13 }
  0xc8   : > { %v164_v3 = vpop.xlane.xlu0 %163 }
  0xc9   : > { %334 = vrsqrt.f32 %v164_v3  ;;  %vm167_vm1 = vcmp.eq.f32.partialorder %v164_v3, inf  ;;  %v170_v6 = vand.u32 2147483648, %v164_v3  ;;  %vm169_vm2 = vcmp.eq.f32.partialorder %v164_v3, 0.0 }
  0xd3   : > { %v335_v4 = vpop.eup %334 }
  0xd4   : > { %v166_v5 = vmul.f32 %v335_v4, %v164_v3 }
  0xd6   : > { %v168_v7 = vsel %vm167_vm1, %v164_v3, %v166_v5 }
  0xd7   : > { %v171_v8 = vsel %vm169_vm2, %v170_v6, %v168_v7 }
  0xd8   : > { %v172_v9 = vmul.f32 0.17677669, %v171_v8 }
  0xda   : > { %v173_v10 = vadd.f32 1e-08, %v172_v9 }
  0xdc   : > { %336 = vrcp.f32 %v173_v10 }
  0xe6   : > { %v337_v11 = vpop.eup %336 }
  0xe7   : > { %v175_v12 = vmul.f32 %v337_v11, %v173_v10 }
  0xe9   : > { %v176_v13 = vsub.f32 2.0, %v175_v12 }
  0xeb   : > { %v177_v14 = vmul.f32 %v337_v11, %v176_v13 }
  0xed   : > { %v178_v15 = vmul.f32 %v177_v14, %v173_v10 }
  0xef   : > { %v179_v16 = vsub.f32 2.0, %v178_v15 }
  0xf1   : > { %v180_v17 = vmul.f32 %v179_v16, %v177_v14 }
  0xf3   : > { %v181_v19 = vmul.f32 %v180_v17, %v159_v0 }
  0xf5   : > { %v189_v20 = vmul.f32 %v283_v18, %v181_v19 }
  0xf7   : > { %190 = vst.msk [vmem:[%s158_s3] sm:$0xff] %vm161_vm0, %v189_v20 }
  0xf8   : > { %381 = shalt.err (!%p378_p4)
}
  0xf9   : > { %s382_s19 = scalar_lea.hbm %s578_s7, 128  ;;  %s386_s25 = scalar_lea.hbm %s625_s2, 256 }
  0xfa   : > { %p383_p5 = scmp.ne.s32.totalorder %s578_s7, %s382_s19  ;;  %p387_p0 = scmp.lt.u32.totalorder %s578_s7, %s625_s2 }
  0xfb   : > { %p388_p1 = scmp.lt.u32.totalorder %s386_s25, %s382_s19  ;;  %p390_p6 = scmp.lt.u32.totalorder %s382_s19, %s578_s7 }
  0xfc   : > { %p384_p8 = pnand %p383_p5, %p634_p11 }
  0xfd   : > { %p389_p3 = por %p388_p1, %p387_p0 }
  0xfe   : > { %p385_p9 = pneg %p384_p8 }
  0xff   : > { %p391_p12 = por %p390_p6, %p389_p3 }
 0x101   : > { %p392_p13 = pnand %p391_p12, %p385_p9 }
 0x103   : > { %395 = shalt.err (!%p392_p13)
}
 0x104   : > { %290 = dma.vmem_to_hbm [thread:$0]  (%p634_p11), %s580_s4, 128, %s578_s7, %s192_s8  }
 0x105 PF: > { %s217_s29 = sand.u32 1, %s422_s9   ;;  %p635_p7 = scmp.ne.s32.totalorder %s630_s22, 0 }
 0x106   : > { %p636_p10 = scmp.ge.s32.totalorder %s434_s12, 2  ;;  %s218_s20 = scalar_lea.sflag [#allocation4], %s217_s29 }
 0x108   : > { %p297_p2 = pnand %p636_p10, %p635_p7 }
 0x10a   : > { %417 = dma.done.wait (!%p297_p2), %s218_s20, 128  }
 0x10b   : > { %419 = vsyncadd (!%p297_p2), %s218_s20, 4294967168  ;;  %p15_p4 = scmp.ge.s32.totalorder %s478_s15, 4   ;;  %s637_s9 = smov %s426_s10 }
 0x10c   : > { %s638_s10 = smov %s430_s11  ;;  %s639_s11 = smov %s490_s18 }
 0x10d   : > { %s640_s12 = smov %s478_s15  ;;  %17 = sbr.rel (!%p15_p4) target bundleno = 5 (0x5), region = 73 }
 0x114   :  { %223 = vsyncpa [#allocation3], 1 }
 0x115   :  { %225 = vsyncpa [#allocation3 + $0x1], 1 }
 0x116   :  { %226 = vsyncpa [#allocation4], 1 }
 0x117   :  { %228 = vsyncpa [#allocation4 + $0x1], 1 }

</bundles_post_ra>
